<compile_context>
chip_gen: v7x
topology: tpu7x:2x2x1
jax: 0.10.0
libtpu: 0.0.40
codegen_flags: <defaults>
</compile_context>

<pallas_src>
import jax
import jax.numpy as jnp
from jax.experimental import pallas as pl
from jax.experimental.pallas import tpu as pltpu


# ----------------------------------------------------------------------------- utils
def _round_up(n, m):
    return (n + m - 1) // m * m


def _pad2(a, rows, cols):
    return jnp.pad(a, ((0, rows - a.shape[0]), (0, cols - a.shape[1])))


def _orthogonal(key, rows, cols, gain=1.0):
    """Deterministic orthogonal init (mirrors nn.init.orthogonal_ semantics).

    NOTE: distributionally equivalent, not bit-identical to torch's QR recipe."""
    n = max(rows, cols)
    a = jax.random.normal(key, (n, n), dtype=jnp.float32)
    q, r = jnp.linalg.qr(a)
    d = jnp.sign(jnp.diag(r))
    d = jnp.where(d == 0, 1.0, d)          # guard against exact-zero diagonal
    q = q * d[None, :]
    return (gain * q[:rows, :cols]).astype(jnp.float32)


# ----------------------------------------------------------------------------- kernel
def inverse_dynamics_kernel(x_ref, xn_ref, wenc_ref, benc_ref,
                            w1a_ref, w1b_ref, b1_ref,
                            w2_ref, b2_ref,
                            w3_ref, b3_ref,
                            out_ref, h_acc, hn_acc):
    """One batch tile; K axis (axis 1) reduces the encoder input dimension."""
    k = pl.program_id(1)

    @pl.when(k == 0)
    def _():
        h_acc[...] = jnp.zeros_like(h_acc)
        hn_acc[...] = jnp.zeros_like(hn_acc)

    # f32 inputs are cast to bf16 on the fly (VPU, free in a memory-bound kernel);
    # both dots share the same resident w_enc tile, accumulation in f32.
    w = wenc_ref[...]
    h_acc[...] += jnp.dot(x_ref[...].astype(jnp.bfloat16), w,
                          preferred_element_type=jnp.float32)
    hn_acc[...] += jnp.dot(xn_ref[...].astype(jnp.bfloat16), w,
                           preferred_element_type=jnp.float32)

    @pl.when(k == pl.num_programs(1) - 1)
    def _():
        h = (h_acc[...] + benc_ref[...]).astype(jnp.bfloat16)
        hn = (hn_acc[...] + benc_ref[...]).astype(jnp.bfloat16)

        # joint_h @ W1 computed concat-free as split matmul (no XLU shuffle / copy).
        a1 = (jnp.dot(h, w1a_ref[...], preferred_element_type=jnp.float32)
              + jnp.dot(hn, w1b_ref[...], preferred_element_type=jnp.float32)
              + b1_ref[...])
        a1 = jnp.maximum(a1, 0.0).astype(jnp.bfloat16)      # ReLU in f32, cast for MXU

        a2 = jnp.dot(a1, w2_ref[...], preferred_element_type=jnp.float32) + b2_ref[...]
        a2 = jnp.maximum(a2, 0.0).astype(jnp.bfloat16)

        out_ref[...] = (jnp.dot(a2, w3_ref[...], preferred_element_type=jnp.float32)
                        + b3_ref[...]).astype(out_ref.dtype)


# ----------------------------------------------------------------------------- wrapper
def inverse_dynamics(x, x_next, params):
    B = x.shape[0]
    x_flat = x.reshape(B, -1).astype(jnp.float32)
    xn_flat = x_next.reshape(B, -1).astype(jnp.float32)

    D = x_flat.shape[1]
    E = params["w_enc"].shape[1]
    Hd = params["w2"].shape[1]
    A = params["w3"].shape[1]

    LANE, SUB = 128, 8

    # --- batch tile ------------------------------------------------------------
    if B >= 256:
        TB = 256
    elif B >= 128:
        TB = 128
    else:
        TB = _round_up(B, SUB)
    B_pad = _round_up(B, TB)
    nB = B_pad // TB
    # Give both v7x TensorCores work on the "parallel" axis when possible
    # (only when the halved tile stays sublane-aligned and actually adds a step).
    if nB == 1 and TB % (2 * SUB) == 0 and B > TB // 2:
        TB //= 2
        B_pad = _round_up(B, TB)
        nB = B_pad // TB

    # --- lane-dense feature dims -------------------------------------------------
    D_pad = _round_up(D, LANE)
    E_pad = _round_up(E, LANE)
    H_pad = _round_up(Hd, LANE)
    A_pad = _round_up(A, LANE)

    # --- encoder K tile ----------------------------------------------------------
    wenc_bytes = D_pad * E_pad * 2                       # bf16 encoder weight
    x_tile_full_bytes = TB * D_pad * 4                   # f32 input tile at TK=D_pad
    if wenc_bytes <= 6 * 1024 * 1024 and x_tile_full_bytes <= 2 * 1024 * 1024:
        # Resident path: single K step, w_enc DMA'd into VMEM exactly once.
        TK = D_pad
    else:
        # K-tiled path: largest 128-multiple divisor of D_pad, capped at 2048.
        TK = LANE
        cand = min(D_pad, 2048)
        while cand >= LANE:
            if D_pad % cand == 0:
                TK = cand
                break
            cand -= LANE
    nK = D_pad // TK

    # --- inputs (kept f32; cast to bf16 in-kernel — no pack/cast HBM round-trip) --
    if B_pad != B or D_pad != D:
        xs = jnp.pad(x_flat, ((0, B_pad - B), (0, D_pad - D)))
        xns = jnp.pad(xn_flat, ((0, B_pad - B), (0, D_pad - D)))
    else:
        xs, xns = x_flat, xn_flat

    # --- weights: zero-pad to lane-dense shapes; matmul operands bf16, biases f32 --
    w_enc = _pad2(params["w_enc"], D_pad, E_pad).astype(jnp.bfloat16)
    b_enc = _pad2(params["b_enc"], 1, E_pad)
    w1a = _pad2(params["w1a"], E_pad, H_pad).astype(jnp.bfloat16)
    w1b = _pad2(params["w1b"], E_pad, H_pad).astype(jnp.bfloat16)
    b1 = _pad2(params["b1"], 1, H_pad)
    w2 = _pad2(params["w2"], H_pad, H_pad).astype(jnp.bfloat16)
    b2 = _pad2(params["b2"], 1, H_pad)
    w3 = _pad2(params["w3"], H_pad, A_pad).astype(jnp.bfloat16)
    b3 = _pad2(params["b3"], 1, A_pad)

    # --- explicit VMEM budget (double-buffered streamed tiles + resident blocks) --
    tile_x_bytes = TB * TK * 4
    tile_w_bytes = TK * E_pad * 2
    streamed = 2 * 2 * tile_x_bytes + 2 * tile_w_bytes
    resident = (2 * E_pad * H_pad + H_pad * H_pad + H_pad * A_pad) * 2 * 2
    resident += (E_pad + 2 * H_pad + A_pad) * 4 * 2
    scratch = 2 * TB * E_pad * 4
    out_bytes = 2 * TB * A_pad * 4
    vmem_needed = streamed + resident + scratch + out_bytes
    try:
        vmem_cap = int(pltpu.get_tpu_info().vmem_capacity_bytes)
    except Exception:
        vmem_cap = 64 * 1024 * 1024                       # conservative (v7x per-TC)
    vmem_limit = int(max(16 * 1024 * 1024, 2 * vmem_needed))
    vmem_limit = int(min(vmem_limit, (vmem_cap * 3) // 4))
    vmem_limit = int(max(vmem_limit, vmem_needed + 2 * 1024 * 1024))

    # --- cost estimate (true input reads, actual number of w_enc passes) ----------
    flops = 2 * (2 * B_pad * D_pad * E_pad + 2 * B_pad * E_pad * H_pad
                 + B_pad * H_pad * H_pad + B_pad * H_pad * A_pad)
    wenc_passes = 1 if nK == 1 else nB
    bytes_accessed = (2 * B_pad * D_pad * 4                             # x, x_next (f32)
                      + wenc_passes * D_pad * E_pad * 2                 # encoder weight
                      + (2 * E_pad * H_pad + H_pad * H_pad + H_pad * A_pad) * 2
                      + (E_pad + 2 * H_pad + A_pad) * 4
                      + B_pad * A_pad * 4)
    cost = pl.CostEstimate(flops=int(flops), transcendentals=0,
                           bytes_accessed=int(bytes_accessed))

    const_map = lambda i, k: (0, 0)
    out = pl.pallas_call(
        inverse_dynamics_kernel,
        out_shape=jax.ShapeDtypeStruct((B_pad, A_pad), jnp.float32),
        grid_spec=pltpu.PrefetchScalarGridSpec(
            num_scalar_prefetch=0,
            grid=(nB, nK),
            in_specs=[
                pl.BlockSpec((TB, TK), lambda i, k: (i, k)),      # x        (f32)
                pl.BlockSpec((TB, TK), lambda i, k: (i, k)),      # x_next   (f32)
                pl.BlockSpec((TK, E_pad), lambda i, k: (k, 0)),   # encoder weight (bf16)
                pl.BlockSpec((1, E_pad), const_map),
                pl.BlockSpec((E_pad, H_pad), const_map),
                pl.BlockSpec((E_pad, H_pad), const_map),
                pl.BlockSpec((1, H_pad), const_map),
                pl.BlockSpec((H_pad, H_pad), const_map),
                pl.BlockSpec((1, H_pad), const_map),
                pl.BlockSpec((H_pad, A_pad), const_map),
                pl.BlockSpec((1, A_pad), const_map),
            ],
            out_specs=pl.BlockSpec((TB, A_pad), lambda i, k: (i, 0)),
            scratch_shapes=[pltpu.VMEM((TB, E_pad), jnp.float32),
                            pltpu.VMEM((TB, E_pad), jnp.float32)],
        ),
        compiler_params=pltpu.CompilerParams(
            dimension_semantics=("parallel", "arbitrary"),
            vmem_limit_bytes=vmem_limit,
        ),
        cost_estimate=cost,
    )(xs, xns, w_enc, b_enc, w1a, w1b, b1, w2, b2, w3, b3)

    return out[:B, :A]


# ----------------------------------------------------------------------------- params
def make_params(key, in_dim, enc_out_dim, hidden_dim, action_dim):
    """Weights stored transposed (in, out) for right-multiplication in-kernel.

    Linear layers: orthogonal weight, zero bias (matches weight_init)."""
    k_enc, k1, k2, k3 = jax.random.split(key, 4)

    # encoder: torch weight (E, D) -> kernel (D, E)
    w_enc = _orthogonal(k_enc, enc_out_dim, in_dim).T
    b_enc = jnp.zeros((1, enc_out_dim), jnp.float32)

    # mlp layer 1: torch weight (H, 2E) -> split into (E, H) + (E, H)
    w1 = _orthogonal(k1, hidden_dim, 2 * enc_out_dim)
    w1a = w1[:, :enc_out_dim].T
    w1b = w1[:, enc_out_dim:].T
    b1 = jnp.zeros((1, hidden_dim), jnp.float32)

    # mlp layer 2: torch weight (H, H) -> (H, H)
    w2 = _orthogonal(k2, hidden_dim, hidden_dim).T
    b2 = jnp.zeros((1, hidden_dim), jnp.float32)

    # mlp layer 3: torch weight (A, H) -> (H, A)
    w3 = _orthogonal(k3, action_dim, hidden_dim).T
    b3 = jnp.zeros((1, action_dim), jnp.float32)

    return dict(w_enc=w_enc, b_enc=b_enc, w1a=w1a, w1b=w1b, b1=b1,
                w2=w2, b2=b2, w3=w3, b3=b3)


# ----------------------------------------------------------------------------- reference
def _reference(x, x_next, params):
    """Plain-JAX reference with the same bf16-operand / f32-accumulate recipe."""
    B = x.shape[0]
    bf = lambda a: a.astype(jnp.bfloat16)
    xf = bf(x.reshape(B, -1))
    xnf = bf(x_next.reshape(B, -1))
    w_enc = bf(params["w_enc"])
    h = jnp.dot(xf, w_enc, preferred_element_type=jnp.float32) + params["b_enc"]
    hn = jnp.dot(xnf, w_enc, preferred_element_type=jnp.float32) + params["b_enc"]
    joint = jnp.concatenate([h, hn], axis=1)
    w1 = bf(jnp.concatenate([params["w1a"], params["w1b"]], axis=0))
    a1 = jnp.maximum(jnp.dot(bf(joint), w1, preferred_element_type=jnp.float32)
                     + params["b1"], 0.0)
    a2 = jnp.maximum(jnp.dot(bf(a1), bf(params["w2"]), preferred_element_type=jnp.float32)
                     + params["b2"], 0.0)
    return (jnp.dot(bf(a2), bf(params["w3"]), preferred_element_type=jnp.float32)
            + params["b3"])


if __name__ == "__main__":
    # Small shapes consistent with the module: batch=2, channels=4, spatial=16
    B, C, H, W = 2, 4, 16, 16
    enc_out_dim = 32       # encoder.out_dim
    hidden_dim = 32
    action_dim = 6         # action_shape[0]
    in_dim = C * H * W     # 1024

    key = jax.random.PRNGKey(0)
    kx, kxn, kp = jax.random.split(key, 3)
    x = jax.random.normal(kx, (B, C, H, W), dtype=jnp.float32)
    x_next = jax.random.normal(kxn, (B, C, H, W), dtype=jnp.float32)

    params = make_params(kp, in_dim, enc_out_dim, hidden_dim, action_dim)

    out = jax.block_until_ready(inverse_dynamics(x, x_next, params))
    ref = _reference(x, x_next, params)

    assert out.shape == (B, action_dim)
    err = jnp.max(jnp.abs(out - ref))
    assert jnp.allclose(out, ref, atol=2e-3, rtol=2e-3), f"max abs err {err}"

    print("KERNEL_OK")
</pallas_src>

<mosaic_0001>
module attributes {stable_mosaic.version = 11 : i64} {
  func.func @inverse_dynamics_kernel(%arg0: i32, %arg1: i32, %arg2: memref<8x1024xf32, #tpu.memory_space<vmem>>, %arg3: memref<8x1024xf32, #tpu.memory_space<vmem>>, %arg4: memref<1024x128xbf16, #tpu.memory_space<vmem>>, %arg5: memref<1x128xf32, #tpu.memory_space<vmem>>, %arg6: memref<128x128xbf16, #tpu.memory_space<vmem>>, %arg7: memref<128x128xbf16, #tpu.memory_space<vmem>>, %arg8: memref<1x128xf32, #tpu.memory_space<vmem>>, %arg9: memref<128x128xbf16, #tpu.memory_space<vmem>>, %arg10: memref<1x128xf32, #tpu.memory_space<vmem>>, %arg11: memref<128x128xbf16, #tpu.memory_space<vmem>>, %arg12: memref<1x128xf32, #tpu.memory_space<vmem>>, %arg13: memref<8x128xf32, #tpu.memory_space<vmem>>, %arg14: memref<8x128xf32, #tpu.memory_space<vmem>>, %arg15: memref<8x128xf32, #tpu.memory_space<vmem>>) attributes {dimension_semantics = [#tpu.dimension_semantics<parallel>, #tpu.dimension_semantics<arbitrary>], iteration_bounds = array<i64: 1, 1>, scalar_prefetch = 0 : i64, scratch_operands = 2 : i64, tpu.core_type = #tpu.core_type<tc>, window_params = [{transform_indices = @transform_0, window_bounds = array<i64: 8, 1024>}, {transform_indices = @transform_1, window_bounds = array<i64: 8, 1024>}, {transform_indices = @transform_2, window_bounds = array<i64: 1024, 128>}, {pipeline_mode = #tpu.pipeline_mode<synchronous>, transform_indices = @transform_3, window_bounds = array<i64: 1, 128>}, {pipeline_mode = #tpu.pipeline_mode<synchronous>, transform_indices = @transform_4, window_bounds = array<i64: 128, 128>}, {pipeline_mode = #tpu.pipeline_mode<synchronous>, transform_indices = @transform_5, window_bounds = array<i64: 128, 128>}, {pipeline_mode = #tpu.pipeline_mode<synchronous>, transform_indices = @transform_6, window_bounds = array<i64: 1, 128>}, {pipeline_mode = #tpu.pipeline_mode<synchronous>, transform_indices = @transform_7, window_bounds = array<i64: 128, 128>}, {pipeline_mode = #tpu.pipeline_mode<synchronous>, transform_indices = @transform_8, window_bounds = array<i64: 1, 128>}, {pipeline_mode = #tpu.pipeline_mode<synchronous>, transform_indices = @transform_9, window_bounds = array<i64: 128, 128>}, {pipeline_mode = #tpu.pipeline_mode<synchronous>, transform_indices = @transform_10, window_bounds = array<i64: 1, 128>}, {transform_indices = @transform_11, window_bounds = array<i64: 8, 128>}]} {
    %c0_i32 = arith.constant 0 : i32
    %0 = arith.cmpi eq, %arg1, %c0_i32 : i32
    %1 = arith.extui %0 : i1 to i32
    %c0_i32_0 = arith.constant 0 : i32
    %2 = arith.cmpi ne, %1, %c0_i32_0 : i32
    scf.if %2 {
      %cst_17 = arith.constant 0.000000e+00 : f32
      %19 = vector.broadcast %cst_17 : f32 to vector<8x128xf32>
      %c0_18 = arith.constant 0 : index
      %c0_19 = arith.constant 0 : index
      %20 = vector.load %arg14[%c0_18, %c0_19] : memref<8x128xf32, #tpu.memory_space<vmem>>, vector<8x128xf32>
      tpu.vector_store %arg14[%c0_18, %c0_19], %19 {strides = array<i32>} : memref<8x128xf32, #tpu.memory_space<vmem>>, vector<8x128xf32>,
      %cst_20 = arith.constant 0.000000e+00 : f32
      %21 = vector.broadcast %cst_20 : f32 to vector<8x128xf32>
      %c0_21 = arith.constant 0 : index
      %c0_22 = arith.constant 0 : index
      %22 = vector.load %arg15[%c0_21, %c0_22] : memref<8x128xf32, #tpu.memory_space<vmem>>, vector<8x128xf32>
      tpu.vector_store %arg15[%c0_21, %c0_22], %21 {strides = array<i32>} : memref<8x128xf32, #tpu.memory_space<vmem>>, vector<8x128xf32>,
    } else {
    }
    %c0 = arith.constant 0 : index
    %c0_1 = arith.constant 0 : index
    %3 = vector.load %arg4[%c0, %c0_1] : memref<1024x128xbf16, #tpu.memory_space<vmem>>, vector<1024x128xbf16>
    %c0_2 = arith.constant 0 : index
    %c0_3 = arith.constant 0 : index
    %4 = vector.load %arg14[%c0_2, %c0_3] : memref<8x128xf32, #tpu.memory_space<vmem>>, vector<8x128xf32>
    %c0_4 = arith.constant 0 : index
    %c0_5 = arith.constant 0 : index
    %5 = vector.load %arg2[%c0_4, %c0_5] : memref<8x1024xf32, #tpu.memory_space<vmem>>, vector<8x1024xf32>
    %6 = arith.truncf %5 : vector<8x1024xf32> to vector<8x1024xbf16>
    %cst = arith.constant dense<0.000000e+00> : vector<8x128xf32>
    %7 = tpu.matmul %6, %3, %cst {dimension_numbers = #tpu.dot_dimension_numbers<[1], [0], [0], [1], [0, 0, 1, 1], [], []>} : vector<8x1024xbf16>, vector<1024x128xbf16>, vector<8x128xf32> -> vector<8x128xf32>
    %8 = arith.addf %4, %7 : vector<8x128xf32>
    %c0_6 = arith.constant 0 : index
    %c0_7 = arith.constant 0 : index
    %9 = vector.load %arg14[%c0_6, %c0_7] : memref<8x128xf32, #tpu.memory_space<vmem>>, vector<8x128xf32>
    tpu.vector_store %arg14[%c0_6, %c0_7], %8 {strides = array<i32>} : memref<8x128xf32, #tpu.memory_space<vmem>>, vector<8x128xf32>,
    %c0_8 = arith.constant 0 : index
    %c0_9 = arith.constant 0 : index
    %10 = vector.load %arg15[%c0_8, %c0_9] : memref<8x128xf32, #tpu.memory_space<vmem>>, vector<8x128xf32>
    %c0_10 = arith.constant 0 : index
    %c0_11 = arith.constant 0 : index
    %11 = vector.load %arg3[%c0_10, %c0_11] : memref<8x1024xf32, #tpu.memory_space<vmem>>, vector<8x1024xf32>
    %12 = arith.truncf %11 : vector<8x1024xf32> to vector<8x1024xbf16>
    %cst_12 = arith.constant dense<0.000000e+00> : vector<8x128xf32>
    %13 = tpu.matmul %12, %3, %cst_12 {dimension_numbers = #tpu.dot_dimension_numbers<[1], [0], [0], [1], [0, 0, 1, 1], [], []>} : vector<8x1024xbf16>, vector<1024x128xbf16>, vector<8x128xf32> -> vector<8x128xf32>
    %14 = arith.addf %10, %13 : vector<8x128xf32>
    %c0_13 = arith.constant 0 : index
    %c0_14 = arith.constant 0 : index
    %15 = vector.load %arg15[%c0_13, %c0_14] : memref<8x128xf32, #tpu.memory_space<vmem>>, vector<8x128xf32>
    tpu.vector_store %arg15[%c0_13, %c0_14], %14 {strides = array<i32>} : memref<8x128xf32, #tpu.memory_space<vmem>>, vector<8x128xf32>,
    %c0_i32_15 = arith.constant 0 : i32
    %16 = arith.cmpi eq, %arg1, %c0_i32_15 : i32
    %17 = arith.extui %16 : i1 to i32
    %c0_i32_16 = arith.constant 0 : i32
    %18 = arith.cmpi ne, %17, %c0_i32_16 : i32
    scf.if %18 {
      %c0_17 = arith.constant 0 : index
      %c0_18 = arith.constant 0 : index
      %19 = vector.load %arg14[%c0_17, %c0_18] : memref<8x128xf32, #tpu.memory_space<vmem>>, vector<8x128xf32>
      %c0_19 = arith.constant 0 : index
      %c0_20 = arith.constant 0 : index
      %20 = vector.load %arg5[%c0_19, %c0_20] : memref<1x128xf32, #tpu.memory_space<vmem>>, vector<1x128xf32>
      %21 = vector.broadcast %20 : vector<1x128xf32> to vector<8x128xf32>
      %22 = arith.addf %19, %21 : vector<8x128xf32>
      %23 = arith.truncf %22 : vector<8x128xf32> to vector<8x128xbf16>
      %c0_21 = arith.constant 0 : index
      %c0_22 = arith.constant 0 : index
      %24 = vector.load %arg15[%c0_21, %c0_22] : memref<8x128xf32, #tpu.memory_space<vmem>>, vector<8x128xf32>
      %c0_23 = arith.constant 0 : index
      %c0_24 = arith.constant 0 : index
      %25 = vector.load %arg5[%c0_23, %c0_24] : memref<1x128xf32, #tpu.memory_space<vmem>>, vector<1x128xf32>
      %26 = vector.broadcast %25 : vector<1x128xf32> to vector<8x128xf32>
      %27 = arith.addf %24, %26 : vector<8x128xf32>
      %28 = arith.truncf %27 : vector<8x128xf32> to vector<8x128xbf16>
      %c0_25 = arith.constant 0 : index
      %c0_26 = arith.constant 0 : index
      %29 = vector.load %arg6[%c0_25, %c0_26] : memref<128x128xbf16, #tpu.memory_space<vmem>>, vector<128x128xbf16>
      %cst_27 = arith.constant dense<0.000000e+00> : vector<8x128xf32>
      %30 = tpu.matmul %23, %29, %cst_27 {dimension_numbers = #tpu.dot_dimension_numbers<[1], [0], [0], [1], [0, 0, 1, 1], [], []>} : vector<8x128xbf16>, vector<128x128xbf16>, vector<8x128xf32> -> vector<8x128xf32>
      %c0_28 = arith.constant 0 : index
      %c0_29 = arith.constant 0 : index
      %31 = vector.load %arg7[%c0_28, %c0_29] : memref<128x128xbf16, #tpu.memory_space<vmem>>, vector<128x128xbf16>
      %cst_30 = arith.constant dense<0.000000e+00> : vector<8x128xf32>
      %32 = tpu.matmul %28, %31, %cst_30 {dimension_numbers = #tpu.dot_dimension_numbers<[1], [0], [0], [1], [0, 0, 1, 1], [], []>} : vector<8x128xbf16>, vector<128x128xbf16>, vector<8x128xf32> -> vector<8x128xf32>
      %33 = arith.addf %30, %32 : vector<8x128xf32>
      %c0_31 = arith.constant 0 : index
      %c0_32 = arith.constant 0 : index
      %34 = vector.load %arg8[%c0_31, %c0_32] : memref<1x128xf32, #tpu.memory_space<vmem>>, vector<1x128xf32>
      %35 = vector.broadcast %34 : vector<1x128xf32> to vector<8x128xf32>
      %36 = arith.addf %33, %35 : vector<8x128xf32>
      %cst_33 = arith.constant 0.000000e+00 : f32
      %37 = vector.broadcast %cst_33 : f32 to vector<8x128xf32>
      %38 = arith.maximumf %36, %37 : vector<8x128xf32>
      %39 = arith.truncf %38 : vector<8x128xf32> to vector<8x128xbf16>
      %c0_34 = arith.constant 0 : index
      %c0_35 = arith.constant 0 : index
      %40 = vector.load %arg9[%c0_34, %c0_35] : memref<128x128xbf16, #tpu.memory_space<vmem>>, vector<128x128xbf16>
      %cst_36 = arith.constant dense<0.000000e+00> : vector<8x128xf32>
      %41 = tpu.matmul %39, %40, %cst_36 {dimension_numbers = #tpu.dot_dimension_numbers<[1], [0], [0], [1], [0, 0, 1, 1], [], []>} : vector<8x128xbf16>, vector<128x128xbf16>, vector<8x128xf32> -> vector<8x128xf32>
      %c0_37 = arith.constant 0 : index
      %c0_38 = arith.constant 0 : index
      %42 = vector.load %arg10[%c0_37, %c0_38] : memref<1x128xf32, #tpu.memory_space<vmem>>, vector<1x128xf32>
      %43 = vector.broadcast %42 : vector<1x128xf32> to vector<8x128xf32>
      %44 = arith.addf %41, %43 : vector<8x128xf32>
      %cst_39 = arith.constant 0.000000e+00 : f32
      %45 = vector.broadcast %cst_39 : f32 to vector<8x128xf32>
      %46 = arith.maximumf %44, %45 : vector<8x128xf32>
      %47 = arith.truncf %46 : vector<8x128xf32> to vector<8x128xbf16>
      %c0_40 = arith.constant 0 : index
      %c0_41 = arith.constant 0 : index
      %48 = vector.load %arg11[%c0_40, %c0_41] : memref<128x128xbf16, #tpu.memory_space<vmem>>, vector<128x128xbf16>
      %cst_42 = arith.constant dense<0.000000e+00> : vector<8x128xf32>
      %49 = tpu.matmul %47, %48, %cst_42 {dimension_numbers = #tpu.dot_dimension_numbers<[1], [0], [0], [1], [0, 0, 1, 1], [], []>} : vector<8x128xbf16>, vector<128x128xbf16>, vector<8x128xf32> -> vector<8x128xf32>
      %c0_43 = arith.constant 0 : index
      %c0_44 = arith.constant 0 : index
      %50 = vector.load %arg12[%c0_43, %c0_44] : memref<1x128xf32, #tpu.memory_space<vmem>>, vector<1x128xf32>
      %51 = vector.broadcast %50 : vector<1x128xf32> to vector<8x128xf32>
      %52 = arith.addf %49, %51 : vector<8x128xf32>
      %c0_45 = arith.constant 0 : index
      %c0_46 = arith.constant 0 : index
      %53 = vector.load %arg13[%c0_45, %c0_46] : memref<8x128xf32, #tpu.memory_space<vmem>>, vector<8x128xf32>
      tpu.vector_store %arg13[%c0_45, %c0_46], %52 {strides = array<i32>} : memref<8x128xf32, #tpu.memory_space<vmem>>, vector<8x128xf32>,
    } else {
    }
    return
  }
  func.func @transform_0(%arg0: i32, %arg1: i32) -> (i32, i32) {
    %c0_i32 = arith.constant 0 : i32
    return %arg0, %arg1 : i32, i32
  }
  func.func @transform_1(%arg0: i32, %arg1: i32) -> (i32, i32) {
    %c0_i32 = arith.constant 0 : i32
    return %arg0, %arg1 : i32, i32
  }
  func.func @transform_2(%arg0: i32, %arg1: i32) -> (i32, i32) {
    %c0_i32 = arith.constant 0 : i32
    %c0_i32_0 = arith.constant 0 : i32
    return %arg1, %c0_i32 : i32, i32
  }
  func.func @transform_3(%arg0: i32, %arg1: i32) -> (i32, i32) {
    %c0_i32 = arith.constant 0 : i32
    %c0_i32_0 = arith.constant 0 : i32
    %c0_i32_1 = arith.constant 0 : i32
    return %c0_i32, %c0_i32_0 : i32, i32
  }
  func.func @transform_4(%arg0: i32, %arg1: i32) -> (i32, i32) {
    %c0_i32 = arith.constant 0 : i32
    %c0_i32_0 = arith.constant 0 : i32
    %c0_i32_1 = arith.constant 0 : i32
    return %c0_i32, %c0_i32_0 : i32, i32
  }
  func.func @transform_5(%arg0: i32, %arg1: i32) -> (i32, i32) {
    %c0_i32 = arith.constant 0 : i32
    %c0_i32_0 = arith.constant 0 : i32
    %c0_i32_1 = arith.constant 0 : i32
    return %c0_i32, %c0_i32_0 : i32, i32
  }
  func.func @transform_6(%arg0: i32, %arg1: i32) -> (i32, i32) {
    %c0_i32 = arith.constant 0 : i32
    %c0_i32_0 = arith.constant 0 : i32
    %c0_i32_1 = arith.constant 0 : i32
    return %c0_i32, %c0_i32_0 : i32, i32
  }
  func.func @transform_7(%arg0: i32, %arg1: i32) -> (i32, i32) {
    %c0_i32 = arith.constant 0 : i32
    %c0_i32_0 = arith.constant 0 : i32
    %c0_i32_1 = arith.constant 0 : i32
    return %c0_i32, %c0_i32_0 : i32, i32
  }
  func.func @transform_8(%arg0: i32, %arg1: i32) -> (i32, i32) {
    %c0_i32 = arith.constant 0 : i32
    %c0_i32_0 = arith.constant 0 : i32
    %c0_i32_1 = arith.constant 0 : i32
    return %c0_i32, %c0_i32_0 : i32, i32
  }
  func.func @transform_9(%arg0: i32, %arg1: i32) -> (i32, i32) {
    %c0_i32 = arith.constant 0 : i32
    %c0_i32_0 = arith.constant 0 : i32
    %c0_i32_1 = arith.constant 0 : i32
    return %c0_i32, %c0_i32_0 : i32, i32
  }
  func.func @transform_10(%arg0: i32, %arg1: i32) -> (i32, i32) {
    %c0_i32 = arith.constant 0 : i32
    %c0_i32_0 = arith.constant 0 : i32
    %c0_i32_1 = arith.constant 0 : i32
    return %c0_i32, %c0_i32_0 : i32, i32
  }
  func.func @transform_11(%arg0: i32, %arg1: i32) -> (i32, i32) {
    %c0_i32 = arith.constant 0 : i32
    %c0_i32_0 = arith.constant 0 : i32
    return %arg0, %c0_i32 : i32, i32
  }
}

</mosaic_0001>

<bundles_post_ra>
// kernel: tpu_custom_call.1
= control target key start
LH: loop header
LB: loop body
LE: loop exit
PB: predicated region body
PF: predicated region fallthrough
CT: control target
= control target key end

     0   :  { %16 = vsyncpa [#allocation5], 0  ;;  %s2661_s0 = inlined_call_operand.hbm [shape: f32[8,1024], index: 0, kind: input, shape index: {}]   ;;  %s2662_s1 = inlined_call_operand.hbm [shape: f32[8,1024], index: 1, kind: input, shape index: {}]   ;;  %s2663_s2 = inlined_call_operand.hbm [shape: bf16[1024,128], index: 2, kind: input, shape index: {}]   ;;  %s2664_s3 = inlined_call_operand.vmem [shape: f32[1,128], index: 3, kind: input, shape index: {}]   ;;  %s2665_s4 = inlined_call_operand.hbm [shape: bf16[128,128], index: 4, kind: input, shape index: {}]   ;;  %s2666_s5 = inlined_call_operand.hbm [shape: bf16[128,128], index: 5, kind: input, shape index: {}]   ;;  %s2667_s6 = inlined_call_operand.vmem [shape: f32[1,128], index: 6, kind: input, shape index: {}]   ;;  %s2668_s7 = inlined_call_operand.hbm [shape: bf16[128,128], index: 7, kind: input, shape index: {}]   ;;  %s2669_s8 = inlined_call_operand.vmem [shape: f32[1,128], index: 8, kind: input, shape index: {}]   ;;  %s2670_s9 = inlined_call_operand.hbm [shape: bf16[128,128], index: 9, kind: input, shape index: {}]   ;;  %s2671_s10 = inlined_call_operand.vmem [shape: f32[1,128], index: 10, kind: input, shape index: {}]   ;;  %s2672_s11 = inlined_call_operand.hbm [shape: f32[8,128], index: 11, kind: output, shape index: {}]  }
   0x1   :  { %17 = vsyncpa [#allocation8], 0 }
   0x2   :  { %18 = vsyncpa [#allocation11], 0 }
   0x3   :  { %19 = vsyncpa [#allocation14], 0 }
   0x4   :  { %20 = vsyncpa [#allocation6], 0  ;;  %s2170_s17 = smov [#allocation7]   ;;  %s1984_s21 = scalar_lea.hbm %s2662_s1, 1024 }
   0x5   :  { %s37_s18 = sshll.u32 %s2170_s17, 4  ;;  %p1985_p0 = scmp.ne.s32.totalorder %s2662_s1, %s1984_s21  ;;  %s38_s18 = int_to_ptr.vmem [resolvable:$true] %s37_s18 }
   0x6   :  { %p1988_p1 = scmp.lt.u32.totalorder %s1984_s21, %s2662_s1 }
   0x8   :  { %p1990_p2 = pnand %p1988_p1, %p1985_p0 }
   0xa   :  { %1993 = shalt.err (!%p1990_p2)
}
   0xb   :  { %s1994_s26 = scalar_lea.vmem %s38_s18, 1024  ;;  %p1999_p4 = scmp.lt.s32.totalorder %s38_s18, %s38_s18 }
   0xc   :  { %p1995_p3 = scmp.ne.s32.totalorder %s38_s18, %s1994_s26  ;;  %p2000_p5 = scmp.lt.s32.totalorder %s1994_s26, %s1994_s26 }
   0xe   :  { %p2001_p6 = por %p2000_p5, %p1999_p4 }
  0x10   :  { %p2002_p7 = pnand %p2001_p6, %p1995_p3 }
  0x12   :  { %2005 = shalt.err (!%p2002_p7)
}
  0x13   :  { %40 = dma.hbm_to_vmem [thread:$0]  %s2662_s1, 1024, %s38_s18, [#allocation8]  }
  0x14   :  { %s2171_s29 = smov [#allocation10]   ;;  %s2172_s12 = smov [#allocation13]  }
  0x15   :  { %s60_s30 = sshll.u32 %s2171_s29, 4  ;;  %s86_s13 = sshll.u32 %s2172_s12, 4  ;;  %s61_s30 = int_to_ptr.vmem [resolvable:$true] %s60_s30  ;;  %s87_s13 = int_to_ptr.vmem [resolvable:$true] %s86_s13 }
  0x16   :  { %s2006_s16 = scalar_lea.hbm %s2665_s4, 1024 }
  0x17   :  { %p2007_p8 = scmp.ne.s32.totalorder %s2665_s4, %s2006_s16  ;;  %p2010_p9 = scmp.lt.u32.totalorder %s2006_s16, %s2665_s4 }
  0x19   :  { %p2012_p10 = pnand %p2010_p9, %p2007_p8 }
  0x1b   :  { %2015 = shalt.err (!%p2012_p10)
}
  0x1c   :  { %s2016_s1 = scalar_lea.vmem %s61_s30, 1024  ;;  %p2021_p12 = scmp.lt.s32.totalorder %s61_s30, %s61_s30 }
  0x1d   :  { %p2017_p11 = scmp.ne.s32.totalorder %s61_s30, %s2016_s1  ;;  %p2022_p13 = scmp.lt.s32.totalorder %s2016_s1, %s2016_s1 }
  0x1f   :  { %p2023_p0 = por %p2022_p13, %p2021_p12 }
  0x21   :  { %p2024_p1 = pnand %p2023_p0, %p2017_p11 }
  0x23   :  { %2027 = shalt.err (!%p2024_p1)
}
  0x24   :  { %s2173_s18 = smov 64   ;;  %s2174_s22 = smov 4  }
  0x25   :  { %66 = dma.hbm_to_vmem [thread:$0]  %s2665_s4, 1024, %s61_s30, [#allocation11], %s2173_s18, %s2173_s18, %s2174_s22  }
  0x26   :  { %s2028_s27 = scalar_lea.hbm %s2668_s7, 1024 }
  0x27   :  { %p2029_p2 = scmp.ne.s32.totalorder %s2668_s7, %s2028_s27  ;;  %p2032_p3 = scmp.lt.u32.totalorder %s2028_s27, %s2668_s7 }
  0x29   :  { %p2034_p4 = pnand %p2032_p3, %p2029_p2 }
  0x2b   :  { %2037 = shalt.err (!%p2034_p4)
}
  0x2c   :  { %s2038_s15 = scalar_lea.vmem %s87_s13, 1024  ;;  %p2043_p6 = scmp.lt.s32.totalorder %s87_s13, %s87_s13 }
  0x2d   :  { %p2039_p5 = scmp.ne.s32.totalorder %s87_s13, %s2038_s15  ;;  %p2044_p7 = scmp.lt.s32.totalorder %s2038_s15, %s2038_s15 }
  0x2f   :  { %p2045_p8 = por %p2044_p7, %p2043_p6 }
  0x31   :  { %p2046_p9 = pnand %p2045_p8, %p2039_p5 }
  0x33   :  { %2049 = shalt.err (!%p2046_p9)
}
  0x34   :  { %92 = dma.hbm_to_vmem [thread:$0]  %s2668_s7, 1024, %s87_s13, [#allocation14], %s2173_s18, %s2173_s18, %s2174_s22  }
  0x35   :  { %s2175_s16 = smov [#allocation4]   ;;  %s2176_s19 = smov [#allocation9]  }
  0x36   :  { %s27_s17 = sshll.u32 %s2175_s16, 4  ;;  %s46_s20 = sshll.u32 %s2176_s19, 4  ;;  %s28_s17 = int_to_ptr.vmem [resolvable:$true] %s27_s17  ;;  %s47_s20 = int_to_ptr.vmem [resolvable:$true] %s46_s20 }
  0x37   :  { %s2050_s23 = scalar_lea.hbm %s2661_s0, 1024 }
  0x38   :  { %p2051_p10 = scmp.ne.s32.totalorder %s2661_s0, %s2050_s23  ;;  %p2054_p11 = scmp.lt.u32.totalorder %s2050_s23, %s2661_s0 }
  0x3a   :  { %p2056_p12 = pnand %p2054_p11, %p2051_p10 }
  0x3c   :  { %2059 = shalt.err (!%p2056_p12)
}
  0x3d   :  { %s2060_s7 = scalar_lea.vmem %s28_s17, 1024  ;;  %p2065_p0 = scmp.lt.s32.totalorder %s28_s17, %s28_s17 }
  0x3e   :  { %p2061_p13 = scmp.ne.s32.totalorder %s28_s17, %s2060_s7  ;;  %p2066_p1 = scmp.lt.s32.totalorder %s2060_s7, %s2060_s7 }
  0x40   :  { %p2067_p2 = por %p2066_p1, %p2065_p0 }
  0x42   :  { %p2068_p3 = pnand %p2067_p2, %p2061_p13 }
  0x44   :  { %2071 = shalt.err (!%p2068_p3)
}
  0x45   :  { %30 = dma.hbm_to_vmem [thread:$0]  %s2661_s0, 1024, %s28_s17, [#allocation5]  }
  0x46   :  { %s2072_s14 = scalar_lea.hbm %s2663_s2, 8192 }
  0x47   :  { %p2073_p4 = scmp.ne.s32.totalorder %s2663_s2, %s2072_s14  ;;  %p2076_p5 = scmp.lt.u32.totalorder %s2072_s14, %s2663_s2 }
  0x49   :  { %p2078_p6 = pnand %p2076_p5, %p2073_p4 }
  0x4b   :  { %2081 = shalt.err (!%p2078_p6)
}
  0x4c   :  { %s2082_s19 = scalar_lea.vmem %s47_s20, 8192  ;;  %p2087_p8 = scmp.lt.s32.totalorder %s47_s20, %s47_s20 }
  0x4d   :  { %p2083_p7 = scmp.ne.s32.totalorder %s47_s20, %s2082_s19  ;;  %p2088_p9 = scmp.lt.s32.totalorder %s2082_s19, %s2082_s19 }
  0x4f   :  { %p2089_p10 = por %p2088_p9, %p2087_p8 }
  0x51   :  { %p2090_p11 = pnand %p2089_p10, %p2083_p7 }
  0x53   :  { %2093 = shalt.err (!%p2090_p11)
}
  0x54   :  { %52 = dma.hbm_to_vmem [thread:$0]  %s2663_s2, 8192, %s47_s20, [#allocation8], %s2173_s18, %s2173_s18, %s2174_s22  }
  0x55   :  { %s2177_s21 = smov [#allocation12]   ;;  %s2178_s23 = smov [#allocation15]  }
  0x56   :  { %s72_s1 = sshll.u32 %s2177_s21, 4  ;;  %s100_s24 = sshll.u32 %s2178_s23, 4  ;;  %s73_s1 = int_to_ptr.vmem [resolvable:$true] %s72_s1  ;;  %s101_s24 = int_to_ptr.vmem [resolvable:$true] %s100_s24 }
  0x57   :  { %s2094_s27 = scalar_lea.hbm %s2666_s5, 1024 }
  0x58   :  { %p2095_p12 = scmp.ne.s32.totalorder %s2666_s5, %s2094_s27  ;;  %p2098_p13 = scmp.lt.u32.totalorder %s2094_s27, %s2666_s5 }
  0x5a   :  { %p2100_p0 = pnand %p2098_p13, %p2095_p12 }
  0x5c   :  { %2103 = shalt.err (!%p2100_p0)
}
  0x5d   :  { %s2104_s2 = scalar_lea.vmem %s73_s1, 1024  ;;  %p2109_p2 = scmp.lt.s32.totalorder %s73_s1, %s73_s1 }
  0x5e   :  { %p2105_p1 = scmp.ne.s32.totalorder %s73_s1, %s2104_s2  ;;  %p2110_p3 = scmp.lt.s32.totalorder %s2104_s2, %s2104_s2 }
  0x60   :  { %p2111_p4 = por %p2110_p3, %p2109_p2 }
  0x62   :  { %p2112_p5 = pnand %p2111_p4, %p2105_p1 }
  0x64   :  { %2115 = shalt.err (!%p2112_p5)
}
  0x65   :  { %78 = dma.hbm_to_vmem [thread:$0]  %s2666_s5, 1024, %s73_s1, [#allocation11], %s2173_s18, %s2173_s18, %s2174_s22  }
  0x66   :  { %s2116_s4 = scalar_lea.hbm %s2670_s9, 1024 }
  0x67   :  { %p2117_p6 = scmp.ne.s32.totalorder %s2670_s9, %s2116_s4  ;;  %p2120_p7 = scmp.lt.u32.totalorder %s2116_s4, %s2670_s9 }
  0x69   :  { %p2122_p8 = pnand %p2120_p7, %p2117_p6 }
  0x6b   :  { %2125 = shalt.err (!%p2122_p8)
}
  0x6c   :  { %s2126_s17 = scalar_lea.vmem %s101_s24, 1024  ;;  %p2131_p10 = scmp.lt.s32.totalorder %s101_s24, %s101_s24 }
  0x6d   :  { %p2127_p9 = scmp.ne.s32.totalorder %s101_s24, %s2126_s17  ;;  %p2132_p11 = scmp.lt.s32.totalorder %s2126_s17, %s2126_s17 }
  0x6f   :  { %p2133_p12 = por %p2132_p11, %p2131_p10 }
  0x71   :  { %p2134_p13 = pnand %p2133_p12, %p2127_p9 }
  0x73   :  { %2137 = shalt.err (!%p2134_p13)
}
  0x74   :  { %106 = dma.hbm_to_vmem [thread:$0]  %s2670_s9, 1024, %s101_s24, [#allocation14], %s2173_s18, %s2173_s18, %s2174_s22  }
  0x75   :  { %2160 = dma.done.wait [#allocation5], 1024  }
  0x76   :  { %2161 = vsyncadd [#allocation5], 4294966272 }
  0x77   :  { %2162 = dma.done.wait [#allocation8], 9216  }
  0x78   :  { %2163 = vsyncadd [#allocation8], 4294958080 }
  0x79   :  { %2164 = dma.done.wait [#allocation11], 2048  }
  0x7a   :  { %2165 = vsyncadd [#allocation11], 4294965248 }
  0x7b   :  { %2166 = dma.done.wait [#allocation14], 2048  }
  0x7c   :  { %2167 = vsyncadd [#allocation14], 4294965248  ;;  %v2341_v0 = vld [vmem:[#allocation9 + $0x40] sm:$0xff]   ;;  %v2352_v4 = vld [vmem:[#allocation9 + $0x48] sm:$0xff]   ;;  %vm2180_vm0 = vmmov 0   ;;  %s2181_s25 = smov [#allocation16]  }
  0x7d   :  { %v2343_v1 = vld [vmem:[#allocation9 + $0xc0] sm:$0xff]   ;;  %1584 = vmatprep.subr.bf16.mxu0 %v2341_v0  ;;  %v2355_v5 = vld [vmem:[#allocation9 + $0xc8] sm:$0xff]   ;;  %v2364_v8 = vld [vmem:[#allocation9 + $0x50] sm:$0xff]   ;;  %s1472_s26 = sshll.u32 %s2181_s25, 4  ;;  %s1473_s26 = int_to_ptr.vmem [resolvable:$true] %s1472_s26 }
  0x7e   :  { %v2346_v2 = vld [vmem:[#allocation9] sm:$0xff]   ;;  %1606 = vmatprep.subr.bf16.mxu1 %v2343_v1  ;;  %v2358_v6 = vld [vmem:[#allocation9 + $0x8] sm:$0xff]   ;;  %v2367_v9 = vld [vmem:[#allocation9 + $0xd0] sm:$0xff]   ;;  %p2143_p1 = scmp.lt.s32.totalorder %s1473_s26, %s1473_s26 }
  0x7f   :  { %v2349_v3 = vld [vmem:[#allocation9 + $0x80] sm:$0xff]   ;;  %1585 = vmatpush3.bf16.msra.mxu0 %v2346_v2  ;;  %v2361_v7 = vld [vmem:[#allocation9 + $0x88] sm:$0xff]   ;;  %v2370_v10 = vld [vmem:[#allocation9 + $0x10] sm:$0xff]  }
  0x80   :  { %1607 = vmatpush3.bf16.msra.mxu1 %v2349_v3  ;;  %1586 = vmatprep.subr.bf16.mxu0 %v2352_v4  ;;  %v2373_v11 = vld [vmem:[#allocation9 + $0x90] sm:$0xff]   ;;  %v2376_v12 = vld [vmem:[#allocation9 + $0x58] sm:$0xff]   ;;  %v2388_v16 = vld [vmem:[#allocation9 + $0x60] sm:$0xff]  }
  0x81   :  { %1608 = vmatprep.subr.bf16.mxu1 %v2355_v5  ;;  %v2379_v13 = vld [vmem:[#allocation9 + $0xd8] sm:$0xff]   ;;  %v2391_v17 = vld [vmem:[#allocation9 + $0xe0] sm:$0xff]   ;;  %v2400_v20 = vld [vmem:[#allocation9 + $0x68] sm:$0xff]  }
  0x82   :  { %v2382_v14 = vld [vmem:[#allocation9 + $0x18] sm:$0xff]   ;;  %v2394_v18 = vld [vmem:[#allocation9 + $0x20] sm:$0xff]   ;;  %v2403_v21 = vld [vmem:[#allocation9 + $0xe8] sm:$0xff]  }
  0x83   :  { %1587 = vmatpush3.bf16.msra.mxu0 %v2358_v6  ;;  %v2385_v15 = vld [vmem:[#allocation9 + $0x98] sm:$0xff]   ;;  %v2397_v19 = vld [vmem:[#allocation9 + $0xa0] sm:$0xff]   ;;  %v2406_v22 = vld [vmem:[#allocation9 + $0x28] sm:$0xff]  }
  0x84   :  { %1609 = vmatpush3.bf16.msra.mxu1 %v2361_v7  ;;  %1588 = vmatprep.subr.bf16.mxu0 %v2364_v8  ;;  %v2409_v23 = vld [vmem:[#allocation9 + $0xa8] sm:$0xff]   ;;  %v2412_v24 = vld [vmem:[#allocation9 + $0x70] sm:$0xff]   ;;  %v2424_v28 = vld [vmem:[#allocation9 + $0x78] sm:$0xff]  }
  0x85   :  { %1610 = vmatprep.subr.bf16.mxu1 %v2367_v9  ;;  %v2415_v25 = vld [vmem:[#allocation9 + $0xf0] sm:$0xff]   ;;  %v2427_v29 = vld [vmem:[#allocation9 + $0xf8] sm:$0xff]   ;;  %v267_v32 = vld [vmem:[#allocation4 + $0x8] sm:$0xff] }
  0x86   :  { %v2418_v26 = vld [vmem:[#allocation9 + $0x30] sm:$0xff]   ;;  %v2430_v30 = vld [vmem:[#allocation9 + $0x38] sm:$0xff]   ;;  %v266_v34 = vld [vmem:[#allocation4] sm:$0xff]  ;;  %v275_v35 = vpack.c.bf16 %v267_v32, %v267_v32 }
  0x87   :  { %1589 = vmatpush3.bf16.msra.mxu0 %v2370_v10  ;;  %v2421_v27 = vld [vmem:[#allocation9 + $0xb0] sm:$0xff]   ;;  %v2433_v31 = vld [vmem:[#allocation9 + $0xb8] sm:$0xff]   ;;  %v274_v37 = vpack.c.bf16 %v266_v34, %v266_v34  ;;  %v2437_v40 = vld [vmem:[#allocation9 + $0x140] sm:$0xff]  }
  0x88   :  { %1611 = vmatpush3.bf16.msra.mxu1 %v2373_v11  ;;  %1590 = vmatprep.subr.bf16.mxu0 %v2376_v12  ;;  %v269_v33 = vld [vmem:[#allocation4 + $0x18] sm:$0xff]  ;;  %v268_v38 = vld [vmem:[#allocation4 + $0x10] sm:$0xff]  ;;  %v2439_v41 = vld [vmem:[#allocation9 + $0x1c0] sm:$0xff]  }
  0x89   :  { %1612 = vmatprep.subr.bf16.mxu1 %v2379_v13  ;;  %v277_v36 = vpack.c.bf16 %v269_v33, %v269_v33  ;;  %v276_v39 = vpack.c.bf16 %v268_v38, %v268_v38  ;;  %698 = vmatprep.mubr.bf16.mxu0 %v275_v35  ;;  %v2441_v42 = vld [vmem:[#allocation9 + $0x100] sm:$0xff]   ;;  %v2448_v44 = vld [vmem:[#allocation9 + $0x148] sm:$0xff]   ;;  %v2460_v48 = vld [vmem:[#allocation9 + $0x150] sm:$0xff]  }
  0x8a   :  { %v2445_v43 = vld [vmem:[#allocation9 + $0x180] sm:$0xff]   ;;  %v2451_v45 = vld [vmem:[#allocation9 + $0x1c8] sm:$0xff]   ;;  %v2463_v49 = vld [vmem:[#allocation9 + $0x1d0] sm:$0xff]  }
  0x8b   :  { %1591 = vmatpush3.bf16.msra.mxu0 %v2382_v14  ;;  %738 = vmatprep.mubr.bf16.mxu1 %v277_v36  ;;  %v2454_v46 = vld [vmem:[#allocation9 + $0x108] sm:$0xff]   ;;  %v2466_v50 = vld [vmem:[#allocation9 + $0x110] sm:$0xff]   ;;  %v2472_v52 = vld [vmem:[#allocation9 + $0x158] sm:$0xff]  }
  0x8c   :  { %1613 = vmatpush3.bf16.msra.mxu1 %v2385_v15  ;;  %1592 = vmatprep.subr.bf16.mxu0 %v2388_v16  ;;  %v2457_v47 = vld [vmem:[#allocation9 + $0x188] sm:$0xff]   ;;  %v2469_v51 = vld [vmem:[#allocation9 + $0x190] sm:$0xff]   ;;  %v2475_v53 = vld [vmem:[#allocation9 + $0x1d8] sm:$0xff]  }
  0x8d   :  { %1614 = vmatprep.subr.bf16.mxu1 %v2391_v17  ;;  %v2478_v54 = vld [vmem:[#allocation9 + $0x118] sm:$0xff]   ;;  %v2484_v56 = vld [vmem:[#allocation9 + $0x160] sm:$0xff]   ;;  %v2496_v60 = vld [vmem:[#allocation9 + $0x168] sm:$0xff]  }
  0x8e   :  { %v2481_v55 = vld [vmem:[#allocation9 + $0x198] sm:$0xff]   ;;  %v2487_v57 = vld [vmem:[#allocation9 + $0x1e0] sm:$0xff]   ;;  %2687 = vst [vmem:[#allocation24_spill] sm:$0xff] %v2496_v60  ;;  %v2499_v61 = vld [vmem:[#allocation9 + $0x1e8] sm:$0xff]  }
  0x8f   :  { %1593 = vmatpush3.bf16.msra.mxu0 %v2394_v18  ;;  %v2490_v58 = vld [vmem:[#allocation9 + $0x120] sm:$0xff]   ;;  %2688 = vst [vmem:[#allocation25_spill] sm:$0xff] %v2499_v61  ;;  %v2502_v62 = vld [vmem:[#allocation9 + $0x128] sm:$0xff]   ;;  %v2508_v32 = vld [vmem:[#allocation9 + $0x170] sm:$0xff]  }
  0x90   :  { %1615 = vmatpush3.bf16.msra.mxu1 %v2397_v19  ;;  %1594 = vmatprep.subr.bf16.mxu0 %v2400_v20  ;;  %2685 = vst [vmem:[#allocation22_spill] sm:$0xff] %v2490_v58  ;;  %v2493_v59 = vld [vmem:[#allocation9 + $0x1a0] sm:$0xff]   ;;  %2689 = vst [vmem:[#allocation26_spill] sm:$0xff] %v2502_v62  ;;  %v2505_v63 = vld [vmem:[#allocation9 + $0x1a8] sm:$0xff]  }
  0x91   :  { %1616 = vmatprep.subr.bf16.mxu1 %v2403_v21  ;;  %2686 = vst [vmem:[#allocation23_spill] sm:$0xff] %v2493_v59  ;;  %2690 = vst [vmem:[#allocation27_spill] sm:$0xff] %v2505_v63  ;;  %v2511_v33 = vld [vmem:[#allocation9 + $0x1f0] sm:$0xff]   ;;  %v2520_v36 = vld [vmem:[#allocation9 + $0x178] sm:$0xff]  }
  0x92   :  { %2691 = vst [vmem:[#allocation28_spill] sm:$0xff] %v2508_v32  ;;  %2692 = vst [vmem:[#allocation29_spill] sm:$0xff] %v2511_v33  ;;  %v2514_v34 = vld [vmem:[#allocation9 + $0x130] sm:$0xff]   ;;  %v2526_v38 = vld [vmem:[#allocation9 + $0x138] sm:$0xff]  }
  0x93   :  { %1595 = vmatpush3.bf16.msra.mxu0 %v2406_v22  ;;  %2693 = vst [vmem:[#allocation30_spill] sm:$0xff] %v2514_v34  ;;  %v2517_v35 = vld [vmem:[#allocation9 + $0x1b0] sm:$0xff]   ;;  %2695 = vst [vmem:[#allocation32_spill] sm:$0xff] %v2520_v36 }
  0x94   :  { %1617 = vmatpush3.bf16.msra.mxu1 %v2409_v23  ;;  %1596 = vmatprep.subr.bf16.mxu0 %v2412_v24  ;;  %2694 = vst [vmem:[#allocation31_spill] sm:$0xff] %v2517_v35 }
  0x95   :  { %1618 = vmatprep.subr.bf16.mxu1 %v2415_v25 }
  0x97   :  { %1597 = vmatpush3.bf16.msra.mxu0 %v2418_v26 }
  0x98   :  { %1619 = vmatpush3.bf16.msra.mxu1 %v2421_v27  ;;  %1598 = vmatprep.subr.bf16.mxu0 %v2424_v28 }
  0x99   :  { %1620 = vmatprep.subr.bf16.mxu1 %v2427_v29 }
  0x9b   :  { %1599 = vmatpush3.bf16.msra.mxu0 %v2430_v30 }
  0x9c   :  { %1621 = vmatpush3.bf16.msra.mxu1 %v2433_v31  ;;  %1628 = vmatprep.subr.bf16.mxu0 %v2437_v40 }
  0x9d   :  { %1650 = vmatprep.subr.bf16.mxu1 %v2439_v41 }
  0x9e   :  { %699 = vmatmul.mubr.bf16.vlgmr.msra.gmra.mrb[0].mxu0 %v274_v37  ;;  %v2523_v37 = vld [vmem:[#allocation9 + $0x1f8] sm:$0xff]  }
  0x9f   :  { %739 = vmatmul.mubr.bf16.vlgmr.msra.gmra.mrb[0].mxu1 %v276_v39  ;;  %1629 = vmatpush3.bf16.msra.mxu0 %v2441_v42  ;;  %2696 = vst [vmem:[#allocation33_spill] sm:$0xff] %v2523_v37  ;;  %v2529_v39 = vld [vmem:[#allocation9 + $0x1b8] sm:$0xff]  }
  0xa0   :  { %1651 = vmatpush3.bf16.msra.mxu1 %v2445_v43  ;;  %1630 = vmatprep.subr.bf16.mxu0 %v2448_v44 }
  0xa1   :  { %1652 = vmatprep.subr.bf16.mxu1 %v2451_v45 }
  0xa3   :  { %1631 = vmatpush3.bf16.msra.mxu0 %v2454_v46 }
  0xa4   :  { %1653 = vmatpush3.bf16.msra.mxu1 %v2457_v47  ;;  %1632 = vmatprep.subr.bf16.mxu0 %v2460_v48 }
  0xa5   :  { %1654 = vmatprep.subr.bf16.mxu1 %v2463_v49 }
  0xa7   :  { %1633 = vmatpush3.bf16.msra.mxu0 %v2466_v50 }
  0xa8   :  { %1655 = vmatpush3.bf16.msra.mxu1 %v2469_v51  ;;  %1634 = vmatprep.subr.bf16.mxu0 %v2472_v52 }
  0xa9   :  { %1656 = vmatprep.subr.bf16.mxu1 %v2475_v53 }
  0xab   :  { %1635 = vmatpush3.bf16.msra.mxu0 %v2478_v54 }
  0xac   :  { %1657 = vmatpush3.bf16.msra.mxu1 %v2481_v55  ;;  %1636 = vmatprep.subr.bf16.mxu0 %v2484_v56 }
  0xad   :  { %1658 = vmatprep.subr.bf16.mxu1 %v2487_v57 }
  0xaf   :  { %1637 = vmatpush3.bf16.msra.mxu0 %v2490_v58 }
  0xb0   :  { %1659 = vmatpush3.bf16.msra.mxu1 %v2493_v59  ;;  %1638 = vmatprep.subr.bf16.mxu0 %v2496_v60  ;;  %v830_v60 = vld [vmem:[#allocation7 + $0x8] sm:$0xff] }
  0xb1   :  { %1660 = vmatprep.subr.bf16.mxu1 %v2499_v61  ;;  %v272_v61 = vld [vmem:[#allocation4 + $0x30] sm:$0xff] }
  0xb2   :  { %v280_v59 = vpack.c.bf16 %v272_v61, %v272_v61 }
  0xb3   :  { %1639 = vmatpush3.bf16.msra.mxu0 %v2502_v62  ;;  %v270_v62 = vld [vmem:[#allocation4 + $0x20] sm:$0xff] }
  0xb4   :  { %1661 = vmatpush3.bf16.msra.mxu1 %v2505_v63  ;;  %1640 = vmatprep.subr.bf16.mxu0 %v2508_v32  ;;  %v271_v32 = vld [vmem:[#allocation4 + $0x28] sm:$0xff] }
  0xb5   :  { %1662 = vmatprep.subr.bf16.mxu1 %v2511_v33  ;;  %v273_v33 = vld [vmem:[#allocation4 + $0x38] sm:$0xff]  ;;  %v279_v63 = vpack.c.bf16 %v271_v32, %v271_v32 }
  0xb7   :  { %1641 = vmatpush3.bf16.msra.mxu0 %v2514_v34  ;;  %v281_v34 = vpack.c.bf16 %v273_v33, %v273_v33  ;;  %778 = vmatprep.mubr.bf16.mxu0 %v279_v63 }
  0xb8   :  { %1663 = vmatpush3.bf16.msra.mxu1 %v2517_v35  ;;  %1642 = vmatprep.subr.bf16.mxu0 %v2520_v36  ;;  %v278_v35 = vpack.c.bf16 %v270_v62, %v270_v62  ;;  %v832_v36 = vld [vmem:[#allocation7 + $0x18] sm:$0xff] }
  0xb9   :  { %1664 = vmatprep.subr.bf16.mxu1 %v2523_v37  ;;  %818 = vmatprep.mubr.bf16.mxu1 %v281_v34  ;;  %v838_v37 = vpack.c.bf16 %v830_v60, %v830_v60  ;;  %v840_v58 = vpack.c.bf16 %v832_v36, %v832_v36 }
  0xbb   :  { %1643 = vmatpush3.bf16.msra.mxu0 %v2526_v38 }
  0xbc   :  { %1665 = vmatpush3.bf16.msra.mxu1 %v2529_v39  ;;  %1672 = vmatprep.subr.bf16.mxu0 %v2341_v0  ;;  %v829_v0 = vld [vmem:[#allocation7] sm:$0xff] }
  0xbd   :  { %1694 = vmatprep.subr.bf16.mxu1 %v2343_v1  ;;  %v831_v1 = vld [vmem:[#allocation7 + $0x10] sm:$0xff] }
  0xbe   :  { %779 = vmatmul.mubr.bf16.vlgmr.msra.gmra.mrb[4].mxu0 %v278_v35 }
  0xbf   :  { %819 = vmatmul.mubr.bf16.vlgmr.msra.gmra.mrb[4].mxu1 %v280_v59  ;;  %1673 = vmatpush3.bf16.msra.mxu0 %v2346_v2  ;;  %v837_v2 = vpack.c.bf16 %v829_v0, %v829_v0 }
  0xc0   :  { %1695 = vmatpush3.bf16.msra.mxu1 %v2349_v3  ;;  %1674 = vmatprep.subr.bf16.mxu0 %v2352_v4  ;;  %v834_v3 = vld [vmem:[#allocation7 + $0x28] sm:$0xff]  ;;  %v839_v4 = vpack.c.bf16 %v831_v1, %v831_v1 }
  0xc1   :  { %1696 = vmatprep.subr.bf16.mxu1 %v2355_v5  ;;  %877 = vmatprep.mubr.bf16.mxu0 %v838_v37  ;;  %v836_v5 = vld [vmem:[#allocation7 + $0x38] sm:$0xff] }
  0xc2   :  { %917 = vmatprep.mubr.bf16.mxu1 %v840_v58 }
  0xc3   :  { %1675 = vmatpush3.bf16.msra.mxu0 %v2358_v6  ;;  %v842_v6 = vpack.c.bf16 %v834_v3, %v834_v3 }
  0xc4   :  { %1697 = vmatpush3.bf16.msra.mxu1 %v2361_v7  ;;  %1676 = vmatprep.subr.bf16.mxu0 %v2364_v8  ;;  %v844_v7 = vpack.c.bf16 %v836_v5, %v836_v5  ;;  %v2697_v8 = vld [vmem:[#allocation22_spill] sm:$0xff] }
  0xc5   :  { %1698 = vmatprep.subr.bf16.mxu1 %v2367_v9  ;;  %v2698_v9 = vld [vmem:[#allocation23_spill] sm:$0xff] }
  0xc7   :  { %1677 = vmatpush3.bf16.msra.mxu0 %v2370_v10  ;;  %v2699_v10 = vld [vmem:[#allocation24_spill] sm:$0xff] }
  0xc8   :  { %1699 = vmatpush3.bf16.msra.mxu1 %v2373_v11  ;;  %1678 = vmatprep.subr.bf16.mxu0 %v2376_v12  ;;  %v2700_v11 = vld [vmem:[#allocation25_spill] sm:$0xff]  ;;  %v2701_v12 = vld [vmem:[#allocation26_spill] sm:$0xff] }
  0xc9   :  { %1700 = vmatprep.subr.bf16.mxu1 %v2379_v13  ;;  %v2702_v13 = vld [vmem:[#allocation27_spill] sm:$0xff] }
  0xcb   :  { %1679 = vmatpush3.bf16.msra.mxu0 %v2382_v14  ;;  %v2703_v14 = vld [vmem:[#allocation28_spill] sm:$0xff] }
  0xcc   :  { %1701 = vmatpush3.bf16.msra.mxu1 %v2385_v15  ;;  %1680 = vmatprep.subr.bf16.mxu0 %v2388_v16  ;;  %v2704_v15 = vld [vmem:[#allocation29_spill] sm:$0xff]  ;;  %v2705_v16 = vld [vmem:[#allocation30_spill] sm:$0xff] }
  0xcd   :  { %1702 = vmatprep.subr.bf16.mxu1 %v2391_v17  ;;  %v833_v17 = vld [vmem:[#allocation7 + $0x20] sm:$0xff] }
  0xcf   :  { %1681 = vmatpush3.bf16.msra.mxu0 %v2394_v18  ;;  %v2706_v18 = vld [vmem:[#allocation31_spill] sm:$0xff] }
  0xd0   :  { %1703 = vmatpush3.bf16.msra.mxu1 %v2397_v19  ;;  %1682 = vmatprep.subr.bf16.mxu0 %v2400_v20  ;;  %v2707_v19 = vld [vmem:[#allocation32_spill] sm:$0xff]  ;;  %v835_v20 = vld [vmem:[#allocation7 + $0x30] sm:$0xff] }
  0xd1   :  { %1704 = vmatprep.subr.bf16.mxu1 %v2403_v21  ;;  %v2708_v21 = vld [vmem:[#allocation33_spill] sm:$0xff] }
  0xd3   :  { %1683 = vmatpush3.bf16.msra.mxu0 %v2406_v22  ;;  %v841_v22 = vpack.c.bf16 %v833_v17, %v833_v17 }
  0xd4   :  { %1705 = vmatpush3.bf16.msra.mxu1 %v2409_v23  ;;  %1684 = vmatprep.subr.bf16.mxu0 %v2412_v24  ;;  %v843_v23 = vpack.c.bf16 %v835_v20, %v835_v20  ;;  %v1952_v24 = vld [vmem:[#allocation10] sm:$0xff]  }
  0xd5   :  { %1706 = vmatprep.subr.bf16.mxu1 %v2415_v25  ;;  %v2179_v25 = vmov 0.0  }
  0xd7   :  { %1685 = vmatpush3.bf16.msra.mxu0 %v2418_v26  ;;  %v1953_v26 = vld [vmem:[#allocation10 + $0x8] sm:$0xff]  }
  0xd8   :  { %1707 = vmatpush3.bf16.msra.mxu1 %v2421_v27  ;;  %1686 = vmatprep.subr.bf16.mxu0 %v2424_v28  ;;  %v1954_v27 = vld [vmem:[#allocation10 + $0x10] sm:$0xff]   ;;  %v1955_v28 = vld [vmem:[#allocation10 + $0x18] sm:$0xff]  }
  0xd9   :  { %1708 = vmatprep.subr.bf16.mxu1 %v2427_v29  ;;  %v1956_v29 = vld [vmem:[#allocation10 + $0x20] sm:$0xff]  }
  0xdb   :  { %1687 = vmatpush3.bf16.msra.mxu0 %v2430_v30  ;;  %v1957_v30 = vld [vmem:[#allocation10 + $0x28] sm:$0xff]  }
  0xdc   :  { %1709 = vmatpush3.bf16.msra.mxu1 %v2433_v31  ;;  %1716 = vmatprep.subr.bf16.mxu0 %v2437_v40  ;;  %v1958_v31 = vld [vmem:[#allocation10 + $0x30] sm:$0xff]   ;;  %v1959_v40 = vld [vmem:[#allocation10 + $0x38] sm:$0xff]  }
  0xdd   :  { %1738 = vmatprep.subr.bf16.mxu1 %v2439_v41  ;;  %v1960_v41 = vld [vmem:[#allocation12] sm:$0xff]  }
  0xde   :  { %878 = vmatmul.mubr.bf16.vlgmr.msra.gmra.mrb[8].mxu0 %v837_v2 }
  0xdf   :  { %918 = vmatmul.mubr.bf16.vlgmr.msra.gmra.mrb[8].mxu1 %v839_v4  ;;  %1717 = vmatpush3.bf16.msra.mxu0 %v2441_v42  ;;  %v1961_v42 = vld [vmem:[#allocation12 + $0x8] sm:$0xff]  }
  0xe0   :  { %1739 = vmatpush3.bf16.msra.mxu1 %v2445_v43  ;;  %1718 = vmatprep.subr.bf16.mxu0 %v2448_v44  ;;  %v1962_v43 = vld [vmem:[#allocation12 + $0x10] sm:$0xff]   ;;  %v1963_v44 = vld [vmem:[#allocation12 + $0x18] sm:$0xff]  }
  0xe1   :  { %1740 = vmatprep.subr.bf16.mxu1 %v2451_v45  ;;  %957 = vmatprep.mubr.bf16.mxu0 %v842_v6  ;;  %v1964_v45 = vld [vmem:[#allocation12 + $0x20] sm:$0xff]  }
  0xe2   :  { %997 = vmatprep.mubr.bf16.mxu1 %v844_v7 }
  0xe3   :  { %1719 = vmatpush3.bf16.msra.mxu0 %v2454_v46  ;;  %v1965_v46 = vld [vmem:[#allocation12 + $0x28] sm:$0xff]  }
  0xe4   :  { %1741 = vmatpush3.bf16.msra.mxu1 %v2457_v47  ;;  %1720 = vmatprep.subr.bf16.mxu0 %v2460_v48  ;;  %v1966_v47 = vld [vmem:[#allocation12 + $0x30] sm:$0xff]   ;;  %v1967_v48 = vld [vmem:[#allocation12 + $0x38] sm:$0xff]  }
  0xe5   :  { %1742 = vmatprep.subr.bf16.mxu1 %v2463_v49 }
  0xe7   :  { %1721 = vmatpush3.bf16.msra.mxu0 %v2466_v50 }
  0xe8   :  { %1743 = vmatpush3.bf16.msra.mxu1 %v2469_v51  ;;  %1722 = vmatprep.subr.bf16.mxu0 %v2472_v52 }
  0xe9   :  { %1744 = vmatprep.subr.bf16.mxu1 %v2475_v53 }
  0xeb   :  { %1723 = vmatpush3.bf16.msra.mxu0 %v2478_v54 }
  0xec   :  { %1745 = vmatpush3.bf16.msra.mxu1 %v2481_v55  ;;  %1724 = vmatprep.subr.bf16.mxu0 %v2484_v56 }
  0xed   :  { %1746 = vmatprep.subr.bf16.mxu1 %v2487_v57 }
  0xef   :  { %1725 = vmatpush3.bf16.msra.mxu0 %v2697_v8 }
  0xf0   :  { %1747 = vmatpush3.bf16.msra.mxu1 %v2698_v9  ;;  %1726 = vmatprep.subr.bf16.mxu0 %v2699_v10 }
  0xf1   :  { %1748 = vmatprep.subr.bf16.mxu1 %v2700_v11 }
  0xf3   :  { %1727 = vmatpush3.bf16.msra.mxu0 %v2701_v12 }
  0xf4   :  { %1749 = vmatpush3.bf16.msra.mxu1 %v2702_v13  ;;  %1728 = vmatprep.subr.bf16.mxu0 %v2703_v14 }
  0xf5   :  { %1750 = vmatprep.subr.bf16.mxu1 %v2704_v15 }
  0xf7   :  { %1729 = vmatpush3.bf16.msra.mxu0 %v2705_v16 }
  0xf8   :  { %1751 = vmatpush3.bf16.msra.mxu1 %v2706_v18  ;;  %1730 = vmatprep.subr.bf16.mxu0 %v2707_v19 }
  0xf9   :  { %1752 = vmatprep.subr.bf16.mxu1 %v2708_v21 }
  0xfb   :  { %1731 = vmatpush3.bf16.msra.mxu0 %v2526_v38 }
  0xfc   :  { %1753 = vmatpush3.bf16.msra.mxu1 %v2529_v39  ;;  %1796 = vmatprep.subr.bf16.mxu0 %v2179_v25  ;;  %v1548_v39 = vld [vmem:[%s2664_s3] ss:$0 sm:$0xff] }
  0xfd   :  { %1816 = vmatprep.subr.bf16.mxu1 %v2179_v25 }
  0xfe   :  { %958 = vmatmul.mubr.bf16.vlgmr.msra.gmra.mrb[12].mxu0 %v841_v22 }
  0xff   :  { %998 = vmatmul.mubr.bf16.vlgmr.msra.gmra.mrb[12].mxu1 %v843_v23  ;;  %1812 = vmatprep.mubr.msk.bf16.mxu0 %vm2180_vm0, %v2179_v25 }
 0x100   :  { %1817 = vmatpush3.bf16.msra.mxu1 %v1952_v24  ;;  %1832 = vmatprep.mubr.msk.bf16.mxu1 %vm2180_vm0, %v2179_v25 }
 0x101   :  { %1818 = vmatprep.subr.bf16.mxu1 %v2179_v25  ;;  %1797 = vmatpush3.bf16.msra.mxu0 %v1960_v41  ;;  %v1972_v41 = vld [vmem:[#allocation13 + $0x20] sm:$0xff]  }
 0x102   :  { %1798 = vmatprep.subr.bf16.mxu0 %v2179_v25 }
 0x104   :  { %1819 = vmatpush3.bf16.msra.mxu1 %v1953_v26 }
 0x105   :  { %1820 = vmatprep.subr.bf16.mxu1 %v2179_v25  ;;  %1799 = vmatpush3.bf16.msra.mxu0 %v1961_v42  ;;  %v1973_v42 = vld [vmem:[#allocation13 + $0x28] sm:$0xff]  }
 0x106   :  { %1800 = vmatprep.subr.bf16.mxu0 %v2179_v25 }
 0x108   :  { %1821 = vmatpush3.bf16.msra.mxu1 %v1954_v27 }
 0x109   :  { %1822 = vmatprep.subr.bf16.mxu1 %v2179_v25  ;;  %1801 = vmatpush3.bf16.msra.mxu0 %v1962_v43  ;;  %v1974_v43 = vld [vmem:[#allocation13 + $0x30] sm:$0xff]  }
 0x10a   :  { %1802 = vmatprep.subr.bf16.mxu0 %v2179_v25 }
 0x10c   :  { %1823 = vmatpush3.bf16.msra.mxu1 %v1955_v28 }
 0x10d   :  { %1824 = vmatprep.subr.bf16.mxu1 %v2179_v25  ;;  %1803 = vmatpush3.bf16.msra.mxu0 %v1963_v44  ;;  %v1975_v44 = vld [vmem:[#allocation13 + $0x38] sm:$0xff]  }
 0x10e   :  { %1804 = vmatprep.subr.bf16.mxu0 %v2179_v25 }
 0x110   :  { %1825 = vmatpush3.bf16.msra.mxu1 %v1956_v29  ;;  %v1968_v29 = vld [vmem:[#allocation13] sm:$0xff]  }
 0x111   :  { %1826 = vmatprep.subr.bf16.mxu1 %v2179_v25  ;;  %1805 = vmatpush3.bf16.msra.mxu0 %v1964_v45  ;;  %v1976_v45 = vld [vmem:[#allocation15] sm:$0xff]  }
 0x112   :  { %1806 = vmatprep.subr.bf16.mxu0 %v2179_v25 }
 0x114   :  { %1827 = vmatpush3.bf16.msra.mxu1 %v1957_v30  ;;  %v1969_v30 = vld [vmem:[#allocation13 + $0x8] sm:$0xff]  }
 0x115   :  { %1828 = vmatprep.subr.bf16.mxu1 %v2179_v25  ;;  %1807 = vmatpush3.bf16.msra.mxu0 %v1965_v46  ;;  %v1977_v46 = vld [vmem:[#allocation15 + $0x8] sm:$0xff]  }
 0x116   :  { %1808 = vmatprep.subr.bf16.mxu0 %v2179_v25 }
 0x118   :  { %1829 = vmatpush3.bf16.msra.mxu1 %v1958_v31  ;;  %v1970_v31 = vld [vmem:[#allocation13 + $0x10] sm:$0xff]  }
 0x119   :  { %1830 = vmatprep.subr.bf16.mxu1 %v2179_v25  ;;  %1809 = vmatpush3.bf16.msra.mxu0 %v1966_v47  ;;  %v1978_v47 = vld [vmem:[#allocation15 + $0x10] sm:$0xff]  }
 0x11a   :  { %1810 = vmatprep.subr.bf16.mxu0 %v2179_v25 }
 0x11c   :  { %1831 = vmatpush3.bf16.msra.mxu1 %v1959_v40  ;;  %v1971_v40 = vld [vmem:[#allocation13 + $0x18] sm:$0xff]  }
 0x11d   :  { %1856 = vmatprep.subr.bf16.mxu1 %v2179_v25  ;;  %1811 = vmatpush3.bf16.msra.mxu0 %v1967_v48  ;;  %v1979_v48 = vld [vmem:[#allocation15 + $0x18] sm:$0xff]  }
 0x11e   :  { %1836 = vmatprep.subr.bf16.mxu0 %v2179_v25 }
 0x171   :  { %v1600_v49 = vpop.f32.mrb[0].mxu0 }
 0x172   :  { %v1622_v50 = vpop.f32.mrb[0].mxu1  ;;  %v1601_v51 = vpop.f32.mrb[1].mxu0 }
 0x173   :  { %v1623_v52 = vpop.f32.mrb[1].mxu1  ;;  %v1602_v53 = vadd.f32 %v1601_v51, %v1600_v49  ;;  %v1603_v55 = vpop.f32.mrb[2].mxu0  ;;  %v1980_v49 = vld [vmem:[#allocation15 + $0x20] sm:$0xff]  }
 0x174   :  { %v1624_v54 = vadd.f32 %v1623_v52, %v1622_v50  ;;  %v1625_v56 = vpop.f32.mrb[2].mxu1  ;;  %v1604_v57 = vpop.f32.mrb[3].mxu0  ;;  %v1981_v50 = vld [vmem:[#allocation15 + $0x28] sm:$0xff]  }
 0x175   :  { %v1626_v58 = vpop.f32.mrb[3].mxu1  ;;  %v1565_v56 = vld [vmem:[%s2667_s6] ss:$0 sm:$0xff] }
 0x176   :  { %v741_v59 = vadd.f32 %v1624_v54, %v1602_v53 }
 0x191   :  { %v1644_v60 = vpop.f32.mrb[4].mxu0 }
 0x192   :  { %v1666_v61 = vpop.f32.mrb[4].mxu1  ;;  %v1645_v62 = vpop.f32.mrb[5].mxu0 }
 0x193   :  { %v1646_v63 = vadd.f32 %v1645_v62, %v1644_v60  ;;  %v1667_v32 = vpop.f32.mrb[5].mxu1  ;;  %v1647_v33 = vpop.f32.mrb[6].mxu0 }
 0x194   :  { %v1668_v34 = vadd.f32 %v1667_v32, %v1666_v61  ;;  %v1669_v35 = vpop.f32.mrb[6].mxu1  ;;  %v1648_v36 = vpop.f32.mrb[7].mxu0  ;;  %v1982_v32 = vld [vmem:[#allocation15 + $0x30] sm:$0xff]   ;;  %v1983_v33 = vld [vmem:[#allocation15 + $0x38] sm:$0xff]  }
 0x195   :  { %v781_v37 = vadd.f32 %v1646_v63, %v741_v59  ;;  %v1670_v38 = vpop.f32.mrb[7].mxu1 }
 0x197   :  { %v821_v0 = vadd.f32 %v1668_v34, %v781_v37  ;;  %v1566_v34 = vld [vmem:[%s2669_s8] ss:$0 sm:$0xff]  ;;  %s2138_s8 = scalar_lea.vmem %s1473_s26, 128 }
 0x198   :  { %p2139_p0 = scmp.ne.s32.totalorder %s1473_s26, %s2138_s8  ;;  %p2144_p2 = scmp.lt.s32.totalorder %s2138_s8, %s2138_s8 }
 0x199   :  { %v1018_v1 = vadd.f32 %v1548_v39, %v821_v0 }
 0x19a   :  { %p2145_p3 = por %p2144_p2, %p2143_p1 }
 0x19b   :  { %v1019_v2 = vpack.c.bf16 %v1018_v1, %v1018_v1 }
 0x19c   :  { %p2146_p4 = pnand %p2145_p3, %p2139_p0 }
 0x19d   :  { %1833 = vmatmul.mubr.bf16.vlgmr.msra.gmra.mrb[16].mxu1 %v1019_v2  ;;  %v1575_v2 = vld [vmem:[%s2671_s10] ss:$0 sm:$0xff] }
 0x19e   :  { %1872 = vmatprep.mubr.msk.bf16.mxu1 %vm2180_vm0, %v2179_v25  ;;  %1857 = vmatpush3.bf16.msra.mxu1 %v1976_v45 }
 0x19f   :  { %1858 = vmatprep.subr.bf16.mxu1 %v2179_v25 }
 0x1a2   :  { %1859 = vmatpush3.bf16.msra.mxu1 %v1977_v46 }
 0x1a3   :  { %1860 = vmatprep.subr.bf16.mxu1 %v2179_v25 }
 0x1a6   :  { %1861 = vmatpush3.bf16.msra.mxu1 %v1978_v47 }
 0x1a7   :  { %1862 = vmatprep.subr.bf16.mxu1 %v2179_v25 }
 0x1aa   :  { %1863 = vmatpush3.bf16.msra.mxu1 %v1979_v48 }
 0x1ab   :  { %1864 = vmatprep.subr.bf16.mxu1 %v2179_v25 }
 0x1ae   :  { %1865 = vmatpush3.bf16.msra.mxu1 %v1980_v49 }
 0x1af   :  { %1866 = vmatprep.subr.bf16.mxu1 %v2179_v25 }
 0x1b1   :  { %v1688_v3 = vpop.f32.mrb[8].mxu0 }
 0x1b2   :  { %v1710_v4 = vpop.f32.mrb[8].mxu1  ;;  %v1689_v5 = vpop.f32.mrb[9].mxu0  ;;  %1867 = vmatpush3.bf16.msra.mxu1 %v1981_v50 }
 0x1b3   :  { %v1690_v6 = vadd.f32 %v1689_v5, %v1688_v3  ;;  %v1711_v7 = vpop.f32.mrb[9].mxu1  ;;  %v1691_v8 = vpop.f32.mrb[10].mxu0  ;;  %1868 = vmatprep.subr.bf16.mxu1 %v2179_v25 }
 0x1b4   :  { %v1712_v9 = vadd.f32 %v1711_v7, %v1710_v4  ;;  %v1713_v10 = vpop.f32.mrb[10].mxu1  ;;  %v1692_v11 = vpop.f32.mrb[11].mxu0 }
 0x1b5   :  { %v1714_v12 = vpop.f32.mrb[11].mxu1 }
 0x1b6   :  { %v920_v13 = vadd.f32 %v1712_v9, %v1690_v6  ;;  %1869 = vmatpush3.bf16.msra.mxu1 %v1982_v32 }
 0x1b7   :  { %1870 = vmatprep.subr.bf16.mxu1 %v2179_v25 }
 0x1ba   :  { %1871 = vmatpush3.bf16.msra.mxu1 %v1983_v33 }
 0x1d1   :  { %v1732_v14 = vpop.f32.mrb[12].mxu0 }
 0x1d2   :  { %v1754_v15 = vpop.f32.mrb[12].mxu1  ;;  %v1733_v16 = vpop.f32.mrb[13].mxu0 }
 0x1d3   :  { %v1734_v17 = vadd.f32 %v1733_v16, %v1732_v14  ;;  %v1755_v18 = vpop.f32.mrb[13].mxu1  ;;  %v1735_v19 = vpop.f32.mrb[14].mxu0 }
 0x1d4   :  { %v1756_v20 = vadd.f32 %v1755_v18, %v1754_v15  ;;  %v1757_v21 = vpop.f32.mrb[14].mxu1  ;;  %v1736_v22 = vpop.f32.mrb[15].mxu0 }
 0x1d5   :  { %v960_v23 = vadd.f32 %v1734_v17, %v920_v13  ;;  %v1758_v24 = vpop.f32.mrb[15].mxu1 }
 0x1d7   :  { %v1000_v26 = vadd.f32 %v1756_v20, %v960_v23 }
 0x1d9   :  { %v1021_v27 = vadd.f32 %v1548_v39, %v1000_v26 }
 0x1db   :  { %v1022_v28 = vpack.c.bf16 %v1021_v27, %v1021_v27 }
 0x1dd   :  { %1813 = vmatmul.mubr.bf16.vlgmr.msra.gmra.mrb[16].mxu0 %v1022_v28 }
 0x1de   :  { %1852 = vmatprep.mubr.msk.bf16.mxu0 %vm2180_vm0, %v2179_v25  ;;  %1837 = vmatpush3.bf16.msra.mxu0 %v1968_v29 }
 0x1df   :  { %1838 = vmatprep.subr.bf16.mxu0 %v2179_v25 }
 0x1e2   :  { %1839 = vmatpush3.bf16.msra.mxu0 %v1969_v30 }
 0x1e3   :  { %1840 = vmatprep.subr.bf16.mxu0 %v2179_v25 }
 0x1e6   :  { %1841 = vmatpush3.bf16.msra.mxu0 %v1970_v31 }
 0x1e7   :  { %1842 = vmatprep.subr.bf16.mxu0 %v2179_v25 }
 0x1ea   :  { %1843 = vmatpush3.bf16.msra.mxu0 %v1971_v40 }
 0x1eb   :  { %1844 = vmatprep.subr.bf16.mxu0 %v2179_v25 }
 0x1ee   :  { %1845 = vmatpush3.bf16.msra.mxu0 %v1972_v41 }
 0x1ef   :  { %1846 = vmatprep.subr.bf16.mxu0 %v2179_v25 }
 0x1f2   :  { %1847 = vmatpush3.bf16.msra.mxu0 %v1973_v42 }
 0x1f3   :  { %1848 = vmatprep.subr.bf16.mxu0 %v2179_v25 }
 0x1f6   :  { %1849 = vmatpush3.bf16.msra.mxu0 %v1974_v43 }
 0x1f7   :  { %1850 = vmatprep.subr.bf16.mxu0 %v2179_v25 }
 0x1fa   :  { %1851 = vmatpush3.bf16.msra.mxu0 %v1975_v44 }
 0x270   :  { %v1225_v51 = vpop.f32.mrb[16].mxu1 }
 0x271   :  { %v1834_v52 = vpop.f32.mrb[17].mxu1 }
 0x272   :  { %v1228_v53 = vpop.f32.mrb[18].mxu1 }
 0x273   :  { %v1835_v54 = vpop.f32.mrb[19].mxu1 }
 0x2b0   :  { %v1137_v55 = vpop.f32.mrb[16].mxu0 }
 0x2b1   :  { %v1226_v57 = vadd.f32 %v1225_v51, %v1137_v55  ;;  %v1814_v58 = vpop.f32.mrb[17].mxu0 }
 0x2b2   :  { %v1140_v59 = vpop.f32.mrb[18].mxu0 }
 0x2b3   :  { %v1238_v60 = vadd.f32 %v1565_v56, %v1226_v57  ;;  %v1815_v61 = vpop.f32.mrb[19].mxu0 }
 0x2b5   :  { %v1239_v62 = vmax.f32 %v1238_v60, 0.0 }
 0x2b7   :  { %v1240_v63 = vpack.c.bf16 %v1239_v62, %v1239_v62 }
 0x2b9   :  { %1853 = vmatmul.mubr.bf16.vlgmr.msra.gmra.mrb[20].mxu0 %v1240_v63 }
 0x38c   :  { %v1346_v35 = vpop.f32.mrb[20].mxu0 }
 0x38d   :  { %v1347_v36 = vadd.f32 %v1566_v34, %v1346_v35  ;;  %v1854_v37 = vpop.f32.mrb[21].mxu0 }
 0x38e   :  { %v1349_v38 = vpop.f32.mrb[22].mxu0 }
 0x38f   :  { %v1352_v39 = vmax.f32 %v1347_v36, 0.0  ;;  %v1855_v0 = vpop.f32.mrb[23].mxu0 }
 0x391   :  { %v1353_v1 = vpack.c.bf16 %v1352_v39, %v1352_v39 }
 0x393   :  { %1873 = vmatmul.mubr.bf16.vlgmr.msra.gmra.mrb[20].mxu1 %v1353_v1 }
 0x466   :  { %v1459_v25 = vpop.f32.mrb[20].mxu1 }
 0x467   :  { %v1460_v3 = vadd.f32 %v1575_v2, %v1459_v25  ;;  %v1874_v4 = vpop.f32.mrb[21].mxu1 }
 0x468   :  { %v1462_v5 = vpop.f32.mrb[22].mxu1 }
 0x469   :  { %1465 = vst [vmem:[#allocation16] sm:$0xff] %v1460_v3  ;;  %v1875_v6 = vpop.f32.mrb[23].mxu1 }
 0x46a   :  { %2149 = shalt.err (!%p2146_p4)
}
 0x46b   :  { %s2150_s10 = scalar_lea.hbm %s2672_s11, 128 }
 0x46c   :  { %p2151_p5 = scmp.ne.s32.totalorder %s2672_s11, %s2150_s10  ;;  %p2154_p6 = scmp.lt.u32.totalorder %s2150_s10, %s2672_s11 }
 0x46e   :  { %p2156_p7 = pnand %p2154_p6, %p2151_p5 }
 0x470   :  { %2159 = shalt.err (!%p2156_p7)
}
 0x471   :  { %1475 = dma.vmem_to_hbm [thread:$0]  %s1473_s26, 128, %s2672_s11, [#allocation6]  }
 0x472   :  { %2168 = dma.done.wait [#allocation6], 128  }
 0x473   :  { %2169 = vsyncadd [#allocation6], 4294967168 }
 0x474   :  { %1479 = vsyncpa [#allocation5], 1 }
 0x475   :  { %1480 = vsyncpa [#allocation8], 1 }
 0x476   :  { %1481 = vsyncpa [#allocation11], 1 }
 0x477   :  { %1482 = vsyncpa [#allocation14], 1 }
 0x478   :  { %1483 = vsyncpa [#allocation6], 1 }

</bundles_post_ra>
